<compile_context>
chip_gen: v5e
topology: v5e:2x2
jax: 0.10.0
libtpu: 0.0.40
codegen_flags: <defaults>
</compile_context>

<pallas_src>
import functools

import jax
import jax.numpy as jnp
from jax.experimental import pallas as pl
from jax.experimental.pallas import tpu as pltpu


def se_gate_kernel(s_ref, w_ref, b_ref, x_ref, o_ref):
    # s_ref: (1, Cin)     squeezed input x111 as a lane row (full array in every block)
    # w_ref: (Cb, Cin)    1x1 conv weight slice for this channel block
    # b_ref: (Cb, 1)      conv bias slice
    # x_ref: (Cb, H*W)    flattened x109 slice (HBM buffer aliased with o_ref)
    s_row = jnp.maximum(s_ref[...], 0.0)                              # ReLU (VPU), (1, Cin)
    # Keep the matvec on VPU multiply + XLU lane reduce; the MXU would be <2% utilized.
    g = jnp.sum(w_ref[...] * s_row, axis=1, keepdims=True)            # (Cb, 1)
    g = jax.nn.sigmoid(g + b_ref[...])                                # EUP sigmoid gate (Cb, 1)
    o_ref[...] = (g * x_ref[...]).astype(o_ref.dtype)                 # broadcast mul over spatial


def _tensorcores_per_chip() -> int:
    try:
        kind = jax.devices()[0].device_kind.lower()
    except Exception:
        return 1
    return 2 if "v7" in kind else 1


@functools.partial(jax.jit, donate_argnums=(1,), static_argnames=("grid_blocks",))
def _se_module_impl(x111, x109, w, b, *, grid_blocks):
    _, cin, _, _ = x111.shape
    _, cout, h, wd = x109.shape
    hw = h * wd

    s = x111.reshape(1, cin).astype(jnp.float32)
    x_flat = x109.reshape(cout, hw)
    w2 = w.reshape(cout, cin).astype(jnp.float32)
    b2 = b.reshape(cout, 1).astype(jnp.float32)

    cost = pl.CostEstimate(
        flops=2 * cout * cin + cout * hw,          # gate matvec + elementwise mul
        transcendentals=cout,                      # sigmoid
        bytes_accessed=2 * cout * hw * 4 + (cout * cin + cout + cin) * 4,
    )

    if grid_blocks > 1:
        # v7x path: parallel channel grid so both TensorCores share the mem-bound body.
        cb = cout // grid_blocks
        grid_spec = pltpu.PrefetchScalarGridSpec(
            num_scalar_prefetch=0,
            grid=(grid_blocks,),
            in_specs=[
                pl.BlockSpec((1, cin), lambda i: (0, 0)),    # s: full array every step
                pl.BlockSpec((cb, cin), lambda i: (i, 0)),   # w slice
                pl.BlockSpec((cb, 1), lambda i: (i, 0)),     # b slice
                pl.BlockSpec((cb, hw), lambda i: (i, 0)),    # x slice
            ],
            out_specs=pl.BlockSpec((cb, hw), lambda i: (i, 0)),
        )
        out_flat = pl.pallas_call(
            se_gate_kernel,
            out_shape=jax.ShapeDtypeStruct((cout, hw), x109.dtype),
            grid_spec=grid_spec,
            input_output_aliases={3: 0},           # reuse x109's HBM buffer for the output
            cost_estimate=cost,
            compiler_params=pltpu.CompilerParams(dimension_semantics=("parallel",)),
        )(s, w2, b2, x_flat)
    else:
        # v5e / v6e path: single full-array block (grid-step overhead would not pay).
        vmem = pl.BlockSpec(memory_space=pltpu.MemorySpace.VMEM)
        out_flat = pl.pallas_call(
            se_gate_kernel,
            out_shape=jax.ShapeDtypeStruct((cout, hw), x109.dtype),
            in_specs=[vmem, vmem, vmem, vmem],
            out_specs=vmem,
            input_output_aliases={3: 0},
            cost_estimate=cost,
        )(s, w2, b2, x_flat)

    return out_flat.reshape(1, cout, h, wd)


def se_module(x111, x109, w, b):
    """x111: (1, Cin, 1, 1), x109: (1, Cout, H, W), w: (Cout, Cin, 1, 1), b: (Cout,).

    NOTE: x109's buffer is donated and written in place; callers must not read x109
    after this call (matches the module's dataflow where x115 replaces x109's slab).
    """
    _, cout, _, _ = x109.shape
    ncores = _tensorcores_per_chip()
    # 3-way split gives sublane-aligned 40-channel blocks (40 % 8 == 0) on v7x megacore.
    grid_blocks = 3 if (ncores >= 2 and cout % 24 == 0) else 1
    return _se_module_impl(x111, x109, w, b, grid_blocks=grid_blocks)


if __name__ == "__main__":
    key = jax.random.PRNGKey(0)
    k1, k2, k3, k4 = jax.random.split(key, 4)

    # Module-implied shapes.
    x111 = jax.random.normal(k1, (1, 30, 1, 1), dtype=jnp.float32)
    x109 = jax.random.normal(k2, (1, 120, 28, 28), dtype=jnp.float32)

    # Deterministic Conv2d(30, 120, 1x1) parameters.
    w = jax.random.normal(k3, (120, 30, 1, 1), dtype=jnp.float32) * 0.1
    b = jax.random.normal(k4, (120,), dtype=jnp.float32) * 0.1

    # Pure-JAX reference, computed BEFORE the kernel (x109 is donated / written in place).
    gate = jax.nn.sigmoid(
        jnp.dot(w.reshape(120, 30), jnp.maximum(x111.reshape(30, 1), 0.0)) + b.reshape(120, 1)
    )
    ref = gate.reshape(1, 120, 1, 1) * x109
    ref = jax.block_until_ready(ref)

    out = se_module(x111, x109, w, b)
    out = jax.block_until_ready(out)

    assert out.shape == (1, 120, 28, 28)
    assert jnp.allclose(out, ref, atol=1e-5, rtol=1e-5)

    print("KERNEL_OK")
</pallas_src>

<mosaic_0001>
module attributes {stable_mosaic.version = 11 : i64} {
  func.func @se_gate_kernel(%arg0: memref<1x30xf32, #tpu.memory_space<vmem>>, %arg1: memref<120x30xf32, #tpu.memory_space<vmem>>, %arg2: memref<120x1xf32, #tpu.memory_space<vmem>>, %arg3: memref<120x784xf32, #tpu.memory_space<vmem>>, %arg4: memref<120x784xf32, #tpu.memory_space<vmem>>) attributes {dimension_semantics = [], scalar_prefetch = 0 : i64, scratch_operands = 0 : i64, tpu.core_type = #tpu.core_type<tc>} {
    %c0 = arith.constant 0 : index
    %c0_0 = arith.constant 0 : index
    %0 = vector.load %arg0[%c0, %c0_0] : memref<1x30xf32, #tpu.memory_space<vmem>>, vector<1x30xf32>
    %cst = arith.constant 0.000000e+00 : f32
    %1 = vector.broadcast %cst : f32 to vector<1x30xf32>
    %2 = arith.maximumf %0, %1 : vector<1x30xf32>
    %c0_1 = arith.constant 0 : index
    %c0_2 = arith.constant 0 : index
    %3 = vector.load %arg1[%c0_1, %c0_2] : memref<120x30xf32, #tpu.memory_space<vmem>>, vector<120x30xf32>
    %4 = vector.broadcast %2 : vector<1x30xf32> to vector<120x30xf32>
    %5 = arith.mulf %3, %4 : vector<120x30xf32>
    %cst_3 = arith.constant dense<0.000000e+00> : vector<120xf32>
    %6 = vector.multi_reduction <add>, %5, %cst_3 [1] : vector<120x30xf32> to vector<120xf32>
    %7 = vector.shape_cast %6 : vector<120xf32> to vector<120x1xf32>
    %c0_4 = arith.constant 0 : index
    %c0_5 = arith.constant 0 : index
    %8 = vector.load %arg2[%c0_4, %c0_5] : memref<120x1xf32, #tpu.memory_space<vmem>>, vector<120x1xf32>
    %9 = arith.addf %7, %8 : vector<120x1xf32>
    %10 = arith.negf %9 : vector<120x1xf32>
    %11 = math.exp %10 : vector<120x1xf32>
    %cst_6 = arith.constant 1.000000e+00 : f32
    %12 = vector.broadcast %cst_6 : f32 to vector<120x1xf32>
    %13 = arith.addf %12, %11 : vector<120x1xf32>
    %14 = arith.divf %12, %13 : vector<120x1xf32>
    %c0_7 = arith.constant 0 : index
    %c0_8 = arith.constant 0 : index
    %15 = vector.load %arg3[%c0_7, %c0_8] : memref<120x784xf32, #tpu.memory_space<vmem>>, vector<120x784xf32>
    %16 = vector.broadcast %14 : vector<120x1xf32> to vector<120x784xf32>
    %17 = arith.mulf %16, %15 : vector<120x784xf32>
    %c0_9 = arith.constant 0 : index
    %c0_10 = arith.constant 0 : index
    %18 = vector.load %arg4[%c0_9, %c0_10] : memref<120x784xf32, #tpu.memory_space<vmem>>, vector<120x784xf32>
    tpu.vector_store %arg4[%c0_9, %c0_10], %17 {strides = array<i32>} : memref<120x784xf32, #tpu.memory_space<vmem>>, vector<120x784xf32>,
    return
  }
}

</mosaic_0001>

<bundles_post_ra>
// kernel: _se_module_impl.1
= control target key start
LH: loop header
LB: loop body
LE: loop exit
PB: predicated region body
PF: predicated region fallthrough
CT: control target
= control target key end

     0   :  { %vm52_vm0 = vcmask 244736   ;;  %v887_v57 = vmov 0   ;;  %s1998_s0 = inlined_call_operand.vmem [shape: f32[1,30], index: 0, kind: input, shape index: {}]   ;;  %s1999_s1 = inlined_call_operand.vmem [shape: f32[120,30], index: 1, kind: input, shape index: {}]   ;;  %s2000_s2 = inlined_call_operand.vmem [shape: f32[120,1], index: 2, kind: input, shape index: {}]   ;;  %s2001_s3 = inlined_call_operand.vmem [shape: f32[120,784], index: 3, kind: input, shape index: {}, may-alias: {3,4}]   ;;  %s2002_s4 = inlined_call_operand.vmem [shape: f32[120,784], index: 4, kind: output, shape index: {}, may-alias: {3,4}]  }
   0x1   :  { %v17_v0 = vld [vmem:[%s1998_s0] sm:$0x1]  ;;  %v21_v2 = vld [vmem:[%s1999_s1 + $0x10] sm:$0xff]  ;;  %v22_v9 = vld [vmem:[%s1999_s1 + $0x18] sm:$0xff]  ;;  %826 = vset.pattern.permute.xlu2 %v887_v57  ;;  %824 = vset.pattern.permute.xlu0 %v887_v57 }
   0x2   :  { %v18_v1 = vmax.f32 %v17_v0, 0.0  ;;  %v19_v3 = vld [vmem:[%s1999_s1] sm:$0xff]  ;;  %v20_v10 = vld [vmem:[%s1999_s1 + $0x8] sm:$0xff]  ;;  %v26_v21 = vld [vmem:[%s1999_s1 + $0x38] sm:$0xff]  ;;  %825 = vset.pattern.permute.xlu1 %v887_v57 }
   0x3   :  { %v23_v4 = vld [vmem:[%s1999_s1 + $0x20] sm:$0xff]  ;;  %v24_v14 = vld [vmem:[%s1999_s1 + $0x28] sm:$0xff]  ;;  %v25_v22 = vld [vmem:[%s1999_s1 + $0x30] sm:$0xff] }
   0x4   :  { %v35_v5 = vperm.slane %v18_v1, 0  ;;  %v27_v23 = vld [vmem:[%s1999_s1 + $0x40] sm:$0xff]  ;;  %v29_v30 = vld [vmem:[%s1999_s1 + $0x50] sm:$0xff]  ;;  %v28_v31 = vld [vmem:[%s1999_s1 + $0x48] sm:$0xff] }
   0x5   :  { %v30_v32 = vld [vmem:[%s1999_s1 + $0x58] sm:$0xff]  ;;  %v32_v39 = vld [vmem:[%s1999_s1 + $0x68] sm:$0xff]  ;;  %v31_v40 = vld [vmem:[%s1999_s1 + $0x60] sm:$0xff] }
   0x6   :  { %v39_v6 = vmul.f32 %v35_v5, %v21_v2  ;;  %v37_v7 = vmul.f32 %v35_v5, %v19_v3  ;;  %v41_v8 = vmul.f32 %v35_v5, %v23_v4  ;;  %v40_v15 = vmul.f32 %v35_v5, %v22_v9  ;;  %v33_v41 = vld [vmem:[%s1999_s1 + $0x70] sm:$0xff]  ;;  %v98_v49 = vld [vmem:[%s2000_s2] sm:$0xff]  ;;  %v101_v61 = vld [vmem:[%s2000_s2 + $0x18] sm:$0xff] }
   0x7   :  { %v38_v16 = vmul.f32 %v35_v5, %v20_v10  ;;  %v42_v17 = vmul.f32 %v35_v5, %v24_v14  ;;  %v44_v24 = vmul.f32 %v35_v5, %v26_v21  ;;  %v43_v25 = vmul.f32 %v35_v5, %v25_v22  ;;  %v100_v48 = vld [vmem:[%s2000_s2 + $0x10] sm:$0xff]  ;;  %v102_v50 = vld [vmem:[%s2000_s2 + $0x20] sm:$0xff]  ;;  %v99_v62 = vld [vmem:[%s2000_s2 + $0x8] sm:$0xff] }
   0x8   :  { %v59_v11 = vsel %vm52_vm0, %v39_v6, 0.0  ;;  %v53_v12 = vsel %vm52_vm0, %v37_v7, 0.0  ;;  %v65_v13 = vsel %vm52_vm0, %v41_v8, 0.0  ;;  %v62_v18 = vsel %vm52_vm0, %v40_v15, 0.0  ;;  %v103_v63 = vld [vmem:[%s2000_s2 + $0x28] sm:$0xff]  ;;  %v105_v14 = vld [vmem:[%s2000_s2 + $0x38] sm:$0xff] }
   0x9   :  { %60 = vadd.xlane.f32.xlu1 %v59_v11  ;;  %54 = vadd.xlane.f32.xlu0 %v53_v12  ;;  %v56_v19 = vsel %vm52_vm0, %v38_v16, 0.0  ;;  %v68_v20 = vsel %vm52_vm0, %v42_v17, 0.0  ;;  %v45_v26 = vmul.f32 %v35_v5, %v27_v23  ;;  %v74_v27 = vsel %vm52_vm0, %v44_v24, 0.0  ;;  %v104_v15 = vld [vmem:[%s2000_s2 + $0x30] sm:$0xff]  ;;  %v106_v17 = vld [vmem:[%s2000_s2 + $0x40] sm:$0xff] }
   0xa   :  { %66 = vadd.xlane.f32.xlu2 %v65_v13  ;;  %v71_v28 = vsel %vm52_vm0, %v43_v25, 0.0  ;;  %v47_v33 = vmul.f32 %v35_v5, %v29_v30  ;;  %v46_v34 = vmul.f32 %v35_v5, %v28_v31  ;;  %v48_v35 = vmul.f32 %v35_v5, %v30_v32 }
   0xb   :  { %v77_v29 = vsel %vm52_vm0, %v45_v26, 0.0  ;;  %v50_v42 = vmul.f32 %v35_v5, %v32_v39  ;;  %v49_v43 = vmul.f32 %v35_v5, %v31_v40  ;;  %v51_v44 = vmul.f32 %v35_v5, %v33_v41  ;;  %v108_v41 = vld [vmem:[%s2000_s2 + $0x50] sm:$0xff] }
   0xc   :  { %v83_v36 = vsel %vm52_vm0, %v47_v33, 0.0  ;;  %v80_v37 = vsel %vm52_vm0, %v46_v34, 0.0  ;;  %v86_v38 = vsel %vm52_vm0, %v48_v35, 0.0 }
   0xd   :  { %v92_v45 = vsel %vm52_vm0, %v50_v42, 0.0  ;;  %v89_v46 = vsel %vm52_vm0, %v49_v43, 0.0  ;;  %v95_v47 = vsel %vm52_vm0, %v51_v44, 0.0  ;;  %v107_v42 = vld [vmem:[%s2000_s2 + $0x48] sm:$0xff] }
  0x11   :  { %63 = vadd.xlane.f32.xlu1 %v62_v18  ;;  %57 = vadd.xlane.f32.xlu0 %v56_v19 }
  0x12   :  { %69 = vadd.xlane.f32.xlu2 %v68_v20 }
  0x19   :  { %75 = vadd.xlane.f32.xlu1 %v74_v27  ;;  %72 = vadd.xlane.f32.xlu0 %v71_v28 }
  0x1a   :  { %78 = vadd.xlane.f32.xlu2 %v77_v29 }
  0x21   :  { %84 = vadd.xlane.f32.xlu1 %v83_v36  ;;  %81 = vadd.xlane.f32.xlu0 %v80_v37 }
  0x22   :  { %87 = vadd.xlane.f32.xlu2 %v86_v38 }
  0x29   :  { %93 = vadd.xlane.f32.xlu1 %v92_v45  ;;  %90 = vadd.xlane.f32.xlu0 %v89_v46 }
  0x2a   :  { %96 = vadd.xlane.f32.xlu2 %v95_v47 }
  0x7c   :  { %v61_v51 = vpop.xlane.xlu1 %60  ;;  %v55_v52 = vpop.xlane.xlu0 %54 }
  0x7d   :  { %v115_v53 = vadd.f32 %v100_v48, %v61_v51  ;;  %v113_v54 = vadd.f32 %v98_v49, %v55_v52  ;;  %v67_v55 = vpop.xlane.xlu2 %66  ;;  %v109_v48 = vld [vmem:[%s2000_s2 + $0x58] sm:$0xff] }
  0x7e   :  { %v117_v56 = vadd.f32 %v102_v50, %v67_v55 }
  0x7f   :  { %v810_v58 = vmul.f32 -1.442695, %v115_v53  ;;  %v808_v59 = vmul.f32 -1.442695, %v113_v54 }
  0x80   :  { %v812_v60 = vmul.f32 -1.442695, %v117_v56 }
  0x81   :  { %827 = vpow2.f32 %v810_v58 }
  0x82   :  { %829 = vpow2.f32 %v808_v59 }
  0x83   :  { %831 = vpow2.f32 %v812_v60 }
  0x84   :  { %v64_v0 = vpop.xlane.xlu1 %63  ;;  %v58_v1 = vpop.xlane.xlu0 %57 }
  0x85   :  { %v116_v2 = vadd.f32 %v101_v61, %v64_v0  ;;  %v114_v3 = vadd.f32 %v99_v62, %v58_v1  ;;  %v70_v4 = vpop.xlane.xlu2 %69 }
  0x86   :  { %v118_v5 = vadd.f32 %v103_v63, %v70_v4 }
  0x87   :  { %v828_v6 = vpop.eup %827  ;;  %v811_v7 = vmul.f32 -1.442695, %v116_v2  ;;  %v809_v12 = vmul.f32 -1.442695, %v114_v3 }
  0x88   :  { %v830_v8 = vpop.eup %829  ;;  %v994_v9 = vadd.f32 1.0, %v828_v6  ;;  %v813_v13 = vmul.f32 -1.442695, %v118_v5 }
  0x89   :  { %v832_v10 = vpop.eup %831  ;;  %v996_v11 = vadd.f32 1.0, %v830_v8  ;;  %833 = vpow2.f32 %v811_v7 }
  0x8a   :  { %835 = vrcp.f32 %v994_v9  ;;  %v1006_v16 = vadd.f32 1.0, %v832_v10  ;;  %v227_v20 = vand.u32 2147483647, %v994_v9  ;;  %v229_v21 = vand.u32 2147483648, %v994_v9 }
  0x8b   :  { %837 = vrcp.f32 %v996_v11  ;;  %v199_v25 = vand.u32 2147483648, %v996_v11  ;;  %v197_v27 = vand.u32 2147483647, %v996_v11  ;;  %vm223_vm1 = vweird.f32 %v994_v9 }
  0x8c   :  { %v76_v18 = vpop.xlane.xlu1 %75  ;;  %v73_v19 = vpop.xlane.xlu0 %72  ;;  %839 = vpow2.f32 %v809_v12  ;;  %v259_v28 = vand.u32 2147483648, %v1006_v16  ;;  %v230_v35 = vor.u32 1.1754944e-38, %v229_v21  ;;  %vm193_vm2 = vweird.f32 %v996_v11 }
  0x8d   :  { %v120_v22 = vadd.f32 %v105_v14, %v76_v18  ;;  %v119_v23 = vadd.f32 %v104_v15, %v73_v19  ;;  %v79_v24 = vpop.xlane.xlu2 %78  ;;  %841 = vpow2.f32 %v813_v13  ;;  %vm1027_vm3 = vcmp.eq.f32.partialorder %v227_v20, 8.507059e+37  ;;  %v110_v20 = vld [vmem:[%s2000_s2 + $0x60] sm:$0xff] }
  0x8e   :  { %v121_v26 = vadd.f32 %v106_v17, %v79_v24  ;;  %843 = vrcp.f32 %v1006_v16  ;;  %v200_v39 = vor.u32 1.1754944e-38, %v199_v25  ;;  %v257_v40 = vand.u32 2147483647, %v1006_v16 }
  0x8f   :  { %v834_v29 = vpop.eup %833  ;;  %v815_v30 = vmul.f32 -1.442695, %v120_v22  ;;  %v814_v31 = vmul.f32 -1.442695, %v119_v23  ;;  %vm1042_vm5 = vcmp.eq.f32.partialorder %v197_v27, 8.507059e+37  ;;  %v1046_v45 = vor.u32 1.1754944e-38, %v259_v28 }
  0x90   :  { %v1018_v32 = vpop.eup %835  ;;  %v1020_v33 = vadd.f32 1.0, %v834_v29  ;;  %v816_v34 = vmul.f32 -1.442695, %v121_v26 }
  0x91   :  { %v1023_v36 = vpop.eup %837  ;;  %845 = vpow2.f32 %v815_v30  ;;  %v219_v37 = vmul.f32 %v1018_v32, %v994_v9  ;;  %vm224_vm4 = vweird.f32 %v1018_v32 }
  0x92   :  { %847 = vrcp.f32 %v1020_v33  ;;  %v189_v43 = vmul.f32 %v1023_v36, %v996_v11  ;;  %v840_v46 = vpop.eup %839  ;;  %vm194_vm6 = vweird.f32 %v1023_v36  ;;  %v242_v49 = vand.u32 2147483647, %v1020_v33  ;;  %vm225_vm8 = vmor %vm223_vm1, %vm224_vm4  ;;  %v111_v11 = vld [vmem:[%s2000_s2 + $0x68] sm:$0xff] }
  0x93   :  { %849 = vpow2.f32 %v814_v31  ;;  %v220_v47 = vsub.f32 1.0, %v219_v37  ;;  %v842_v50 = vpop.eup %841  ;;  %v1053_v51 = vadd.f32 1.0, %v840_v46  ;;  %v244_v55 = vand.u32 2147483648, %v1020_v33  ;;  %vm195_vm9 = vmor %vm193_vm2, %vm194_vm6 }
  0x94   :  { %851 = vpow2.f32 %v816_v34  ;;  %v85_v52 = vpop.xlane.xlu1 %84  ;;  %v82_v53 = vpop.xlane.xlu0 %81  ;;  %v190_v54 = vsub.f32 1.0, %v189_v43  ;;  %v1058_v57 = vadd.f32 1.0, %v842_v50  ;;  %vm238_vm7 = vweird.f32 %v1020_v33 }
  0x95   :  { %v1056_v56 = vpop.eup %843  ;;  %v123_v58 = vadd.f32 %v108_v41, %v85_v52  ;;  %v122_v59 = vadd.f32 %v107_v42, %v82_v53  ;;  %v221_v60 = vmul.f32 %v1018_v32, %v220_v47  ;;  %v88_v61 = vpop.xlane.xlu2 %87  ;;  %853 = vrcp.f32 %v1053_v51 }
  0x96   :  { %v191_v62 = vmul.f32 %v1023_v36, %v190_v54  ;;  %v124_v63 = vadd.f32 %v109_v48, %v88_v61  ;;  %855 = vrcp.f32 %v1058_v57  ;;  %v1077_v8 = vmul.f32 %v1056_v56, %v1006_v16 }
  0x97   :  { %v846_v0 = vpop.eup %845  ;;  %v818_v1 = vmul.f32 -1.442695, %v123_v58  ;;  %v817_v2 = vmul.f32 -1.442695, %v122_v59  ;;  %v222_v3 = vadd.f32 %v1018_v32, %v221_v60  ;;  %vm1086_vm10 = vcmp.eq.f32.partialorder %v242_v49, 8.507059e+37 }
  0x98   :  { %v1066_v4 = vpop.eup %847  ;;  %v1068_v5 = vadd.f32 1.0, %v846_v0  ;;  %v192_v6 = vadd.f32 %v1023_v36, %v191_v62  ;;  %v819_v7 = vmul.f32 -1.442695, %v124_v63  ;;  %v245_v14 = vor.u32 1.1754944e-38, %v244_v55 }
  0x99   :  { %v850_v10 = vpop.eup %849  ;;  %857 = vpow2.f32 %v818_v1  ;;  %v226_v12 = vsel %vm225_vm8, %v1018_v32, %v222_v3  ;;  %v234_v9 = vmul.f32 %v1066_v4, %v1020_v33  ;;  %vm239_vm11 = vweird.f32 %v1066_v4  ;;  %v112_v32 = vld [vmem:[%s2000_s2 + $0x70] sm:$0xff] }
  0x9a   :  { %v852_v15 = vpop.eup %851  ;;  %859 = vrcp.f32 %v1068_v5  ;;  %v1091_v17 = vadd.f32 1.0, %v850_v10  ;;  %v231_v18 = vsel %vm1027_vm3, %v230_v35, %v226_v12  ;;  %v196_v19 = vsel %vm195_vm9, %v1023_v36, %v192_v6  ;;  %vm240_vm15 = vmor %vm238_vm7, %vm239_vm11 }
  0x9b   :  { %v1102_v21 = vadd.f32 1.0, %v852_v15  ;;  %861 = vpow2.f32 %v817_v2  ;;  %530 = vperm.xlu2 %826, %v231_v18   ;;  %v201_v22 = vsel %vm1042_vm5, %v200_v39, %v196_v19  ;;  %v235_v23 = vsub.f32 1.0, %v234_v9  ;;  %v1106_v24 = vpop.eup %853 }
  0x9c   :  { %863 = vrcp.f32 %v1091_v17  ;;  %520 = vperm.xlu0 %824, %v201_v22   ;;  %v94_v25 = vpop.xlane.xlu1 %93  ;;  %v91_v26 = vpop.xlane.xlu0 %90  ;;  %vm208_vm12 = vweird.f32 %v1053_v51  ;;  %v212_v27 = vand.u32 2147483647, %v1053_v51  ;;  %v204_v35 = vmul.f32 %v1106_v24, %v1053_v51 }
  0x9d   :  { %v1112_v28 = vpop.eup %855  ;;  %865 = vrcp.f32 %v1102_v21  ;;  %v126_v29 = vadd.f32 %v111_v11, %v94_v25  ;;  %v125_v30 = vadd.f32 %v110_v20, %v91_v26  ;;  %v236_v31 = vmul.f32 %v1066_v4, %v235_v23  ;;  %v97_v34 = vpop.xlane.xlu2 %96 }
  0x9e   :  { %867 = vpow2.f32 %v819_v7  ;;  %vm209_vm13 = vweird.f32 %v1106_v24  ;;  %v214_v36 = vand.u32 2147483648, %v1053_v51  ;;  %vm1124_vm14 = vcmp.eq.f32.partialorder %v212_v27, 8.507059e+37 }
  0x9f   :  { %v858_v37 = vpop.eup %857  ;;  %v821_v38 = vmul.f32 -1.442695, %v126_v29  ;;  %v820_v39 = vmul.f32 -1.442695, %v125_v30  ;;  %v237_v41 = vadd.f32 %v1066_v4, %v236_v31  ;;  %v205_v46 = vsub.f32 1.0, %v204_v35  ;;  %vm210_vm3 = vmor %vm208_vm12, %vm209_vm13 }
  0xa0   :  { %v1128_v43 = vpop.eup %859  ;;  %v1130_v44 = vadd.f32 1.0, %v858_v37  ;;  %v127_v47 = vadd.f32 %v112_v32, %v97_v34  ;;  %v264_v48 = vmul.f32 %v1112_v28, %v1058_v57  ;;  %vm268_vm0 = vweird.f32 %v1058_v57 }
  0xa1   :  { %v862_v49 = vpop.eup %861  ;;  %869 = vpow2.f32 %v821_v38  ;;  %v241_v50 = vsel %vm240_vm15, %v1066_v4, %v237_v41  ;;  %vm269_vm1 = vweird.f32 %v1112_v28  ;;  %vm253_vm2 = vweird.f32 %v1006_v16 }
  0xa2   :  { %v1142_v52 = vpop.eup %863  ;;  %871 = vrcp.f32 %v1130_v44  ;;  %v1145_v33 = vadd.f32 1.0, %v862_v49  ;;  %v246_v53 = vsel %vm1086_vm10, %v245_v14, %v241_v50  ;;  %v206_v54 = vmul.f32 %v1106_v24, %v205_v46  ;;  %vm1176_vm5 = vmor %vm268_vm0, %vm269_vm1 }
  0xa3   :  { %v1150_v55 = vpop.eup %865  ;;  %873 = vpow2.f32 %v820_v39  ;;  %535 = vperm.xlu2 %826, %v246_v53   ;;  %v822_v58 = vmul.f32 -1.442695, %v127_v47  ;;  %v265_v59 = vsub.f32 1.0, %v264_v48  ;;  %v272_v60 = vand.u32 2147483647, %v1058_v57 }
  0xa4   :  { %v868_v61 = vpop.eup %867  ;;  %875 = vrcp.f32 %v1145_v33  ;;  %v207_v62 = vadd.f32 %v1106_v24, %v206_v54  ;;  %v274_v63 = vand.u32 2147483648, %v1058_v57  ;;  %v294_v0 = vmul.f32 %v1128_v43, %v1068_v5 }
  0xa5   :  { %v1158_v1 = vadd.f32 1.0, %v868_v61  ;;  %v215_v2 = vor.u32 1.1754944e-38, %v214_v36  ;;  %877 = vpow2.f32 %v822_v58  ;;  %v266_v3 = vmul.f32 %v1112_v28, %v265_v59 }
  0xa6   :  { %vm1167_vm4 = vcmp.eq.f32.partialorder %v257_v40, 8.507059e+37  ;;  %v211_v6 = vsel %vm210_vm3, %v1106_v24, %v207_v62  ;;  %vm1180_vm6 = vcmp.eq.f32.partialorder %v272_v60, 8.507059e+37  ;;  %v275_v10 = vor.u32 1.1754944e-38, %v274_v63 }
  0xa7   :  { %v295_v12 = vsub.f32 1.0, %v294_v0  ;;  %v870_v40 = vpop.eup %869  ;;  %v216_v9 = vsel %vm1124_vm14, %v215_v2, %v211_v6  ;;  %v267_v13 = vadd.f32 %v1112_v28, %v266_v3  ;;  %vm298_vm7 = vweird.f32 %v1068_v5 }
  0xa8   :  { %vm299_vm8 = vweird.f32 %v1128_v43  ;;  %v1189_v57 = vpop.eup %871  ;;  %v1191_v14 = vadd.f32 1.0, %v870_v40  ;;  %525 = vperm.xlu1 %825, %v216_v9   ;;  %v302_v18 = vand.u32 2147483647, %v1068_v5  ;;  %v304_v19 = vand.u32 2147483648, %v1068_v5 }
  0xa9   :  { %v296_v15 = vmul.f32 %v1128_v43, %v295_v12  ;;  %v874_v11 = vpop.eup %873  ;;  %v271_v20 = vsel %vm1176_vm5, %v1112_v28, %v267_v13  ;;  %v250_v22 = vsub.f32 1.0, %v1077_v8  ;;  %vm254_vm9 = vweird.f32 %v1056_v56  ;;  %vm300_vm10 = vmor %vm298_vm7, %vm299_vm8 }
  0xaa   :  { %v309_v23 = vmul.f32 %v1150_v55, %v1102_v21  ;;  %v1203_v24 = vpop.eup %875  ;;  %879 = vrcp.f32 %v1158_v1  ;;  %v1206_v25 = vadd.f32 1.0, %v874_v11  ;;  %v276_v26 = vsel %vm1180_vm6, %v275_v10, %v271_v20  ;;  %vm1224_vm12 = vmor %vm253_vm2, %vm254_vm9 }
  0xab   :  { %v297_v27 = vadd.f32 %v1128_v43, %v296_v15  ;;  %v878_v29 = vpop.eup %877  ;;  %881 = vrcp.f32 %v1191_v14  ;;  %545 = vperm.xlu2 %826, %v276_v26   ;;  %v305_v8 = vor.u32 1.1754944e-38, %v304_v19  ;;  %v251_v28 = vmul.f32 %v1056_v56, %v250_v22 }
  0xac   :  { %v310_v30 = vsub.f32 1.0, %v309_v23  ;;  %v1217_v31 = vadd.f32 1.0, %v878_v29  ;;  %vm303_vm11 = vcmp.eq.f32.partialorder %v302_v18, 8.507059e+37  ;;  %vm313_vm13 = vweird.f32 %v1102_v21 }
  0xad   :  { %v301_v32 = vsel %vm300_vm10, %v1128_v43, %v297_v27  ;;  %v252_v35 = vadd.f32 %v1056_v56, %v251_v28  ;;  %vm314_vm14 = vweird.f32 %v1150_v55  ;;  %883 = vrcp.f32 %v1206_v25 }
  0xae   :  { %v306_v5 = vsel %vm303_vm11, %v305_v8, %v301_v32  ;;  %v311_v36 = vmul.f32 %v1150_v55, %v310_v30  ;;  %vm1233_vm15 = vmor %vm313_vm13, %vm314_vm14  ;;  %v317_v16 = vand.u32 2147483647, %v1102_v21  ;;  %v319_v38 = vand.u32 2147483648, %v1102_v21 }
  0xaf   :  { %555 = vperm.xlu0 %824, %v306_v5   ;;  %v339_v39 = vmul.f32 %v1189_v57, %v1130_v44  ;;  %885 = vrcp.f32 %v1217_v31  ;;  %v256_v41 = vsel %vm1224_vm12, %v1056_v56, %v252_v35  ;;  %v347_v56 = vand.u32 2147483647, %v1130_v44 }
  0xb0   :  { %v312_v42 = vadd.f32 %v1150_v55, %v311_v36  ;;  %v1246_v43 = vpop.eup %879  ;;  %v261_v46 = vsel %vm1167_vm4, %v1046_v45, %v256_v41  ;;  %vm318_vm0 = vcmp.eq.f32.partialorder %v317_v16, 8.507059e+37  ;;  %v320_v47 = vor.u32 1.1754944e-38, %v319_v38 }
  0xb1   :  { %v340_v21 = vsub.f32 1.0, %v339_v39  ;;  %v1251_v48 = vpop.eup %881  ;;  %540 = vperm.xlu1 %825, %v261_v46   ;;  %v349_v50 = vand.u32 2147483648, %v1130_v44  ;;  %v279_v53 = vmul.f32 %v1142_v52, %v1091_v17  ;;  %vm343_vm1 = vweird.f32 %v1130_v44 }
  0xb2   :  { %v316_v49 = vsel %vm1233_vm15, %v1150_v55, %v312_v42  ;;  %vm344_vm2 = vweird.f32 %v1189_v57  ;;  %vm283_vm3 = vweird.f32 %v1091_v17  ;;  %vm284_vm4 = vweird.f32 %v1142_v52 }
  0xb3   :  { %v321_v54 = vsel %vm318_vm0, %v320_v47, %v316_v49  ;;  %v341_v45 = vmul.f32 %v1189_v57, %v340_v21  ;;  %v280_v58 = vsub.f32 1.0, %v279_v53  ;;  %v287_v55 = vand.u32 2147483647, %v1091_v17  ;;  %v1266_v59 = vpop.eup %883  ;;  %vm345_vm6 = vmor %vm343_vm1, %vm344_vm2 }
  0xb4   :  { %560 = vperm.xlu2 %826, %v321_v54   ;;  %vm348_vm5 = vcmp.eq.f32.partialorder %v347_v56, 8.507059e+37  ;;  %v289_v61 = vand.u32 2147483648, %v1091_v17  ;;  %v354_v44 = vmul.f32 %v1246_v43, %v1158_v1  ;;  %v350_v63 = vor.u32 1.1754944e-38, %v349_v50  ;;  %vm285_vm10 = vmor %vm283_vm3, %vm284_vm4 }
  0xb5   :  { %v342_v60 = vadd.f32 %v1189_v57, %v341_v45  ;;  %v1272_v62 = vpop.eup %885  ;;  %v281_v0 = vmul.f32 %v1142_v52, %v280_v58  ;;  %vm358_vm7 = vweird.f32 %v1158_v1  ;;  %v362_v2 = vand.u32 2147483647, %v1158_v1  ;;  %v427_v45 = vld [vmem:[%s2001_s3 + $0x70] sm:$0xff]  ;;  %v428_v58 = vld [vmem:[%s2001_s3 + $0x78] sm:$0xff] }
  0xb6   :  { %v355_v4 = vsub.f32 1.0, %v354_v44  ;;  %vm359_vm8 = vweird.f32 %v1246_v43  ;;  %v364_v6 = vand.u32 2147483648, %v1158_v1  ;;  %vm288_vm9 = vcmp.eq.f32.partialorder %v287_v55, 8.507059e+37  ;;  %v430_v55 = vld [vmem:[%s2001_s3 + $0x88] sm:$0xff] }
  0xb7   :  { %v346_v3 = vsel %vm345_vm6, %v1189_v57, %v342_v60  ;;  %v282_v51 = vadd.f32 %v1142_v52, %v281_v0  ;;  %v384_v10 = vmul.f32 %v1251_v48, %v1191_v14  ;;  %v290_v12 = vor.u32 1.1754944e-38, %v289_v61  ;;  %vm1295_vm12 = vmor %vm358_vm7, %vm359_vm8  ;;  %v432_v61 = vld [vmem:[%s2001_s3 + $0x98] sm:$0xff]  ;;  %v433_v0 = vld [vmem:[%s2001_s3 + $0xa0] sm:$0xff] }
  0xb8   :  { %v351_v7 = vsel %vm348_vm5, %v350_v63, %v346_v3  ;;  %v356_v40 = vmul.f32 %v1246_v43, %v355_v4  ;;  %vm1288_vm11 = vcmp.eq.f32.partialorder %v362_v2, 8.507059e+37  ;;  %v365_v13 = vor.u32 1.1754944e-38, %v364_v6 }
  0xb9   :  { %570 = vperm.xlu0 %824, %v351_v7   ;;  %v286_v57 = vsel %vm285_vm10, %v1142_v52, %v282_v51  ;;  %v385_v18 = vsub.f32 1.0, %v384_v10  ;;  %v392_v17 = vand.u32 2147483647, %v1191_v14  ;;  %v394_v19 = vand.u32 2147483648, %v1191_v14 }
  0xba   :  { %v291_v11 = vsel %vm288_vm9, %v290_v12, %v286_v57  ;;  %v357_v20 = vadd.f32 %v1246_v43, %v356_v40  ;;  %vm388_vm13 = vweird.f32 %v1191_v14  ;;  %v324_v22 = vmul.f32 %v1203_v24, %v1145_v33 }
  0xbb   :  { %550 = vperm.xlu1 %825, %v291_v11   ;;  %v386_v52 = vmul.f32 %v1251_v48, %v385_v18  ;;  %vm389_vm14 = vweird.f32 %v1251_v48  ;;  %vm1307_vm15 = vcmp.eq.f32.partialorder %v392_v17, 8.507059e+37  ;;  %vm328_vm0 = vweird.f32 %v1145_v33 }
  0xbc   :  { %v361_v23 = vsel %vm1295_vm12, %v1246_v43, %v357_v20  ;;  %v395_v26 = vor.u32 1.1754944e-38, %v394_v19  ;;  %v325_v27 = vsub.f32 1.0, %v324_v22  ;;  %vm329_vm1 = vweird.f32 %v1203_v24  ;;  %vm390_vm2 = vmor %vm388_vm13, %vm389_vm14 }
  0xbd   :  { %v366_v29 = vsel %vm1288_vm11, %v365_v13, %v361_v23  ;;  %v387_v8 = vadd.f32 %v1251_v48, %v386_v52  ;;  %v334_v28 = vand.u32 2147483648, %v1145_v33  ;;  %v399_v30 = vmul.f32 %v1272_v62, %v1217_v31  ;;  %vm330_vm5 = vmor %vm328_vm0, %vm329_vm1 }
  0xbe   :  { %575 = vperm.xlu2 %826, %v366_v29   ;;  %v326_v32 = vmul.f32 %v1203_v24, %v325_v27  ;;  %v332_v34 = vand.u32 2147483647, %v1145_v33  ;;  %vm403_vm3 = vweird.f32 %v1217_v31  ;;  %vm404_vm4 = vweird.f32 %v1272_v62 }
  0xbf   :  { %v391_v5 = vsel %vm390_vm2, %v1251_v48, %v387_v8  ;;  %v400_v35 = vsub.f32 1.0, %v399_v30  ;;  %v407_v36 = vand.u32 2147483647, %v1217_v31  ;;  %v409_v37 = vand.u32 2147483648, %v1217_v31  ;;  %vm405_vm7 = vmor %vm403_vm3, %vm404_vm4 }
  0xc0   :  { %v396_v16 = vsel %vm1307_vm15, %v395_v26, %v391_v5  ;;  %v327_v14 = vadd.f32 %v1203_v24, %v326_v32  ;;  %v369_v38 = vmul.f32 %v1266_v59, %v1206_v25  ;;  %v335_v39 = vor.u32 1.1754944e-38, %v334_v28 }
  0xc1   :  { %585 = vperm.xlu0 %824, %v396_v16   ;;  %v401_v41 = vmul.f32 %v1272_v62, %v400_v35  ;;  %vm333_vm6 = vcmp.eq.f32.partialorder %v332_v34, 8.507059e+37  ;;  %v410_v43 = vor.u32 1.1754944e-38, %v409_v37  ;;  %vm408_vm8 = vcmp.eq.f32.partialorder %v407_v36, 8.507059e+37 }
  0xc2   :  { %v331_v42 = vsel %vm330_vm5, %v1203_v24, %v327_v14  ;;  %v370_v46 = vsub.f32 1.0, %v369_v38  ;;  %vm373_vm9 = vweird.f32 %v1206_v25  ;;  %vm374_vm10 = vweird.f32 %v1266_v59 }
  0xc3   :  { %v336_v47 = vsel %vm333_vm6, %v335_v39, %v331_v42  ;;  %v402_v21 = vadd.f32 %v1272_v62, %v401_v41  ;;  %v379_v24 = vand.u32 2147483648, %v1206_v25  ;;  %v377_v56 = vand.u32 2147483647, %v1206_v25  ;;  %vm375_vm11 = vmor %vm373_vm9, %vm374_vm10  ;;  %v429_v25 = vld [vmem:[%s2001_s3 + $0x80] sm:$0xff] }
  0xc4   :  { %565 = vperm.xlu1 %825, %v336_v47   ;;  %v371_v48 = vmul.f32 %v1266_v59, %v370_v46  ;;  %vm704_vm13 = vcmask 130048  }
  0xc5   :  { %v406_v33 = vsel %vm405_vm7, %v1272_v62, %v402_v21  ;;  %v380_v53 = vor.u32 1.1754944e-38, %v379_v24  ;;  %vm378_vm12 = vcmp.eq.f32.partialorder %v377_v56, 8.507059e+37 }
  0xc6   :  { %v411_v49 = vsel %vm408_vm8, %v410_v43, %v406_v33  ;;  %v372_v31 = vadd.f32 %v1266_v59, %v371_v48 }
  0xc7   :  { %590 = vperm.xlu2 %826, %v411_v49  }
  0xc8   :  { %v376_v50 = vsel %vm375_vm11, %v1266_v59, %v372_v31  ;;  %v431_v59 = vld [vmem:[%s2001_s3 + $0x90] sm:$0xff] }
  0xc9   :  { %v381_v54 = vsel %vm378_vm12, %v380_v53, %v376_v50 }
  0xcc   :  { %580 = vperm.xlu1 %825, %v381_v54  }
  0xf5   :  { %v531_v60 = vpop.permute.xlu2 %530 }
  0xf6   :  { %v607_v44 = vmul.f32 %v531_v60, %v427_v45  ;;  %v608_v62 = vmul.f32 %v531_v60, %v428_v58  ;;  %v609_v63 = vmul.f32 %v531_v60, %v429_v25  ;;  %v610_v2 = vmul.f32 %v531_v60, %v430_v55 }
  0xf7   :  { %v611_v3 = vmul.f32 %v531_v60, %v431_v59  ;;  %v612_v4 = vmul.f32 %v531_v60, %v432_v61  ;;  %v613_v6 = vmul.f32 %v531_v60, %v433_v0 }
  0xf8   :  { %713 = vst [vmem:[%s2002_s4 + $0x70] sm:$0xff] %v607_v44 }
  0xf9   :  { %714 = vst [vmem:[%s2002_s4 + $0x78] sm:$0xff] %v608_v62 }
  0xfa   :  { %715 = vst [vmem:[%s2002_s4 + $0x80] sm:$0xff] %v609_v63 }
  0xfb   :  { %716 = vst [vmem:[%s2002_s4 + $0x88] sm:$0xff] %v610_v2 }
  0xfd   :  { %v536_v9 = vpop.permute.xlu2 %535 }
 0x102   :  { %v434_v7 = vld [vmem:[%s2001_s3 + $0xa8] sm:$0xff]  ;;  %v435_v51 = vld [vmem:[%s2001_s3 + $0xb0] sm:$0xff]  ;;  %v436_v10 = vld [vmem:[%s2001_s3 + $0xb8] sm:$0xff] }
 0x103   :  { %717 = vst [vmem:[%s2002_s4 + $0x90] sm:$0xff] %v611_v3  ;;  %v614_v57 = vmul.f32 %v536_v9, %v434_v7  ;;  %v615_v15 = vmul.f32 %v536_v9, %v435_v51  ;;  %v616_v18 = vmul.f32 %v536_v9, %v436_v10 }
 0x105   :  { %v546_v29 = vpop.permute.xlu2 %545 }
 0x10a   :  { %v437_v12 = vld [vmem:[%s2001_s3 + $0xc0] sm:$0xff] }
 0x10b   :  { %718 = vst [vmem:[%s2002_s4 + $0x98] sm:$0xff] %v612_v4  ;;  %v617_v19 = vmul.f32 %v536_v9, %v437_v12 }
 0x10e   :  { %v561_v42 = vpop.permute.xlu2 %560  ;;  %v521_v31 = vpop.permute.xlu0 %520 }
 0x112   :  { %v438_v40 = vld [vmem:[%s2001_s3 + $0xc8] sm:$0xff] }
 0x113   :  { %719 = vst.msk [vmem:[%s2002_s4 + $0xa0] sm:$0xff] %vm704_vm13, %v613_v6  ;;  %v618_v11 = vmul.f32 %v536_v9, %v438_v40 }
 0x118   :  { %v576_v3 = vpop.permute.xlu2 %575 }
 0x11a   :  { %v439_v13 = vld [vmem:[%s2001_s3 + $0xd0] sm:$0xff]  ;;  %v440_v17 = vld [vmem:[%s2001_s3 + $0xd8] sm:$0xff] }
 0x11b   :  { %720 = vst [vmem:[%s2002_s4 + $0xa8] sm:$0xff] %v614_v57  ;;  %v619_v20 = vmul.f32 %v536_v9, %v439_v13  ;;  %v620_v22 = vmul.f32 %v536_v9, %v440_v17  ;;  %v526_v17 = vpop.permute.xlu1 %525 }
 0x11c   :  { %721 = vst [vmem:[%s2002_s4 + $0xb0] sm:$0xff] %v615_v15 }
 0x11d   :  { %722 = vst [vmem:[%s2002_s4 + $0xb8] sm:$0xff] %v616_v18 }
 0x11e   :  { %723 = vst [vmem:[%s2002_s4 + $0xc0] sm:$0xff] %v617_v19 }
 0x125   :  { %v448_v52 = vld [vmem:[%s2001_s3 + $0x118] sm:$0xff]  ;;  %v449_v1 = vld [vmem:[%s2001_s3 + $0x120] sm:$0xff]  ;;  %v450_v23 = vld [vmem:[%s2001_s3 + $0x128] sm:$0xff] }
 0x126   :  { %724 = vst [vmem:[%s2002_s4 + $0xc8] sm:$0xff] %v618_v11  ;;  %v628_v28 = vmul.f32 %v546_v29, %v448_v52  ;;  %v629_v30 = vmul.f32 %v546_v29, %v449_v1  ;;  %v630_v32 = vmul.f32 %v546_v29, %v450_v23 }
 0x12d   :  { %v451_v26 = vld [vmem:[%s2001_s3 + $0x130] sm:$0xff] }
 0x12e   :  { %725 = vst [vmem:[%s2002_s4 + $0xd0] sm:$0xff] %v619_v20  ;;  %v631_v5 = vmul.f32 %v546_v29, %v451_v26 }
 0x135   :  { %v452_v27 = vld [vmem:[%s2001_s3 + $0x138] sm:$0xff] }
 0x136   :  { %726 = vst.msk [vmem:[%s2002_s4 + $0xd8] sm:$0xff] %vm704_vm13, %v620_v22  ;;  %v632_v35 = vmul.f32 %v546_v29, %v452_v27 }
 0x13d   :  { %v453_v8 = vld [vmem:[%s2001_s3 + $0x140] sm:$0xff]  ;;  %v454_v34 = vld [vmem:[%s2001_s3 + $0x148] sm:$0xff] }
 0x13e   :  { %734 = vst [vmem:[%s2002_s4 + $0x118] sm:$0xff] %v628_v28  ;;  %v633_v36 = vmul.f32 %v546_v29, %v453_v8  ;;  %v634_v37 = vmul.f32 %v546_v29, %v454_v34  ;;  %v591_v34 = vpop.permute.xlu2 %590 }
 0x13f   :  { %735 = vst [vmem:[%s2002_s4 + $0x120] sm:$0xff] %v629_v30 }
 0x140   :  { %736 = vst [vmem:[%s2002_s4 + $0x128] sm:$0xff] %v630_v32 }
 0x141   :  { %737 = vst [vmem:[%s2002_s4 + $0x130] sm:$0xff] %v631_v5 }
 0x148   :  { %v469_v16 = vld [vmem:[%s2001_s3 + $0x1c0] sm:$0xff]  ;;  %v470_v14 = vld [vmem:[%s2001_s3 + $0x1c8] sm:$0xff]  ;;  %v471_v38 = vld [vmem:[%s2001_s3 + $0x1d0] sm:$0xff] }
 0x149   :  { %738 = vst [vmem:[%s2002_s4 + $0x138] sm:$0xff] %v632_v35  ;;  %v649_v46 = vmul.f32 %v561_v42, %v469_v16  ;;  %v650_v47 = vmul.f32 %v561_v42, %v470_v14  ;;  %v651_v21 = vmul.f32 %v561_v42, %v471_v38 }
 0x150   :  { %v472_v39 = vld [vmem:[%s2001_s3 + $0x1d8] sm:$0xff] }
 0x151   :  { %739 = vst [vmem:[%s2002_s4 + $0x140] sm:$0xff] %v633_v36  ;;  %v652_v33 = vmul.f32 %v561_v42, %v472_v39 }
 0x158   :  { %v473_v41 = vld [vmem:[%s2001_s3 + $0x1e0] sm:$0xff] }
 0x159   :  { %740 = vst.msk [vmem:[%s2002_s4 + $0x148] sm:$0xff] %vm704_vm13, %v634_v37  ;;  %v653_v24 = vmul.f32 %v561_v42, %v473_v41 }
 0x160   :  { %v474_v43 = vld [vmem:[%s2001_s3 + $0x1e8] sm:$0xff]  ;;  %v475_v48 = vld [vmem:[%s2001_s3 + $0x1f0] sm:$0xff] }
 0x161   :  { %755 = vst [vmem:[%s2002_s4 + $0x1c0] sm:$0xff] %v649_v46  ;;  %v654_v56 = vmul.f32 %v561_v42, %v474_v43  ;;  %v655_v53 = vmul.f32 %v561_v42, %v475_v48  ;;  %v541_v48 = vpop.permute.xlu1 %540 }
 0x168   :  { %v413_v49 = vld [vmem:[%s2001_s3] sm:$0xff] }
 0x169   :  { %756 = vst [vmem:[%s2002_s4 + $0x1c8] sm:$0xff] %v650_v47  ;;  %v593_v58 = vmul.f32 %v521_v31, %v413_v49 }
 0x170   :  { %v414_v50 = vld [vmem:[%s2001_s3 + $0x8] sm:$0xff] }
 0x171   :  { %757 = vst [vmem:[%s2002_s4 + $0x1d0] sm:$0xff] %v651_v21  ;;  %v594_v55 = vmul.f32 %v521_v31, %v414_v50 }
 0x178   :  { %v415_v54 = vld [vmem:[%s2001_s3 + $0x10] sm:$0xff] }
 0x179   :  { %758 = vst [vmem:[%s2002_s4 + $0x1d8] sm:$0xff] %v652_v33  ;;  %v595_v60 = vmul.f32 %v521_v31, %v415_v54 }
 0x180   :  { %v416_v45 = vld [vmem:[%s2001_s3 + $0x18] sm:$0xff] }
 0x181   :  { %759 = vst [vmem:[%s2002_s4 + $0x1e0] sm:$0xff] %v653_v24  ;;  %v596_v44 = vmul.f32 %v521_v31, %v416_v45 }
 0x188   :  { %v417_v25 = vld [vmem:[%s2001_s3 + $0x20] sm:$0xff] }
 0x189   :  { %760 = vst [vmem:[%s2002_s4 + $0x1e8] sm:$0xff] %v654_v56  ;;  %v597_v62 = vmul.f32 %v521_v31, %v417_v25 }
 0x190   :  { %v418_v59 = vld [vmem:[%s2001_s3 + $0x28] sm:$0xff] }
 0x191   :  { %761 = vst.msk [vmem:[%s2002_s4 + $0x1f0] sm:$0xff] %vm704_vm13, %v655_v53  ;;  %v598_v0 = vmul.f32 %v521_v31, %v418_v59 }
 0x198   :  { %v419_v61 = vld [vmem:[%s2001_s3 + $0x30] sm:$0xff] }
 0x199   :  { %698 = vst [vmem:[%s2002_s4] sm:$0xff] %v593_v58  ;;  %v599_v4 = vmul.f32 %v521_v31, %v419_v61  ;;  %v556_v61 = vpop.permute.xlu0 %555 }
 0x1a0   :  { %v490_v63 = vld [vmem:[%s2001_s3 + $0x268] sm:$0xff] }
 0x1a1   :  { %699 = vst [vmem:[%s2002_s4 + $0x8] sm:$0xff] %v594_v55  ;;  %v670_v51 = vmul.f32 %v576_v3, %v490_v63 }
 0x1a8   :  { %v491_v2 = vld [vmem:[%s2001_s3 + $0x270] sm:$0xff] }
 0x1a9   :  { %700 = vst [vmem:[%s2002_s4 + $0x10] sm:$0xff] %v595_v60  ;;  %v671_v12 = vmul.f32 %v576_v3, %v491_v2 }
 0x1b0   :  { %v492_v6 = vld [vmem:[%s2001_s3 + $0x278] sm:$0xff] }
 0x1b1   :  { %701 = vst [vmem:[%s2002_s4 + $0x18] sm:$0xff] %v596_v44  ;;  %v672_v9 = vmul.f32 %v576_v3, %v492_v6 }
 0x1b8   :  { %v493_v7 = vld [vmem:[%s2001_s3 + $0x280] sm:$0xff] }
 0x1b9   :  { %702 = vst [vmem:[%s2002_s4 + $0x20] sm:$0xff] %v597_v62  ;;  %v673_v57 = vmul.f32 %v576_v3, %v493_v7 }
 0x1c0   :  { %v494_v10 = vld [vmem:[%s2001_s3 + $0x288] sm:$0xff] }
 0x1c1   :  { %703 = vst [vmem:[%s2002_s4 + $0x28] sm:$0xff] %v598_v0  ;;  %v674_v15 = vmul.f32 %v576_v3, %v494_v10 }
 0x1c8   :  { %v495_v40 = vld [vmem:[%s2001_s3 + $0x290] sm:$0xff] }
 0x1c9   :  { %705 = vst.msk [vmem:[%s2002_s4 + $0x30] sm:$0xff] %vm704_vm13, %v599_v4  ;;  %v675_v19 = vmul.f32 %v576_v3, %v495_v40 }
 0x1d0   :  { %v496_v13 = vld [vmem:[%s2001_s3 + $0x298] sm:$0xff] }
 0x1d1   :  { %776 = vst [vmem:[%s2002_s4 + $0x268] sm:$0xff] %v670_v51  ;;  %v676_v20 = vmul.f32 %v576_v3, %v496_v13  ;;  %v551_v13 = vpop.permute.xlu1 %550 }
 0x1d8   :  { %v420_v18 = vld [vmem:[%s2001_s3 + $0x38] sm:$0xff] }
 0x1d9   :  { %777 = vst [vmem:[%s2002_s4 + $0x270] sm:$0xff] %v671_v12  ;;  %v600_v1 = vmul.f32 %v526_v17, %v420_v18 }
 0x1e0   :  { %v421_v11 = vld [vmem:[%s2001_s3 + $0x40] sm:$0xff] }
 0x1e1   :  { %778 = vst [vmem:[%s2002_s4 + $0x278] sm:$0xff] %v672_v9  ;;  %v601_v26 = vmul.f32 %v526_v17, %v421_v11 }
 0x1e8   :  { %v422_v22 = vld [vmem:[%s2001_s3 + $0x48] sm:$0xff] }
 0x1e9   :  { %779 = vst [vmem:[%s2002_s4 + $0x280] sm:$0xff] %v673_v57  ;;  %v602_v29 = vmul.f32 %v526_v17, %v422_v22 }
 0x1f0   :  { %v423_v52 = vld [vmem:[%s2001_s3 + $0x50] sm:$0xff] }
 0x1f1   :  { %780 = vst [vmem:[%s2002_s4 + $0x288] sm:$0xff] %v674_v15  ;;  %v603_v28 = vmul.f32 %v526_v17, %v423_v52 }
 0x1f8   :  { %v424_v23 = vld [vmem:[%s2001_s3 + $0x58] sm:$0xff] }
 0x1f9   :  { %781 = vst [vmem:[%s2002_s4 + $0x290] sm:$0xff] %v675_v19  ;;  %v604_v30 = vmul.f32 %v526_v17, %v424_v23 }
 0x200   :  { %v425_v27 = vld [vmem:[%s2001_s3 + $0x60] sm:$0xff] }
 0x201   :  { %782 = vst.msk [vmem:[%s2002_s4 + $0x298] sm:$0xff] %vm704_vm13, %v676_v20  ;;  %v605_v5 = vmul.f32 %v526_v17, %v425_v27 }
 0x208   :  { %v426_v8 = vld [vmem:[%s2001_s3 + $0x68] sm:$0xff] }
 0x209   :  { %706 = vst [vmem:[%s2002_s4 + $0x38] sm:$0xff] %v600_v1  ;;  %v606_v36 = vmul.f32 %v526_v17, %v426_v8  ;;  %v571_v8 = vpop.permute.xlu0 %570 }
 0x210   :  { %v511_v32 = vld [vmem:[%s2001_s3 + $0x310] sm:$0xff] }
 0x211   :  { %707 = vst [vmem:[%s2002_s4 + $0x40] sm:$0xff] %v601_v26  ;;  %v691_v14 = vmul.f32 %v591_v34, %v511_v32 }
 0x218   :  { %v512_v35 = vld [vmem:[%s2001_s3 + $0x318] sm:$0xff] }
 0x219   :  { %708 = vst [vmem:[%s2002_s4 + $0x48] sm:$0xff] %v602_v29  ;;  %v692_v39 = vmul.f32 %v591_v34, %v512_v35 }
 0x220   :  { %v513_v37 = vld [vmem:[%s2001_s3 + $0x320] sm:$0xff] }
 0x221   :  { %709 = vst [vmem:[%s2002_s4 + $0x50] sm:$0xff] %v603_v28  ;;  %v693_v42 = vmul.f32 %v591_v34, %v513_v37 }
 0x228   :  { %v514_v16 = vld [vmem:[%s2001_s3 + $0x328] sm:$0xff] }
 0x229   :  { %710 = vst [vmem:[%s2002_s4 + $0x58] sm:$0xff] %v604_v30  ;;  %v694_v46 = vmul.f32 %v591_v34, %v514_v16 }
 0x230   :  { %v515_v38 = vld [vmem:[%s2001_s3 + $0x330] sm:$0xff] }
 0x231   :  { %711 = vst [vmem:[%s2002_s4 + $0x60] sm:$0xff] %v605_v5  ;;  %v695_v47 = vmul.f32 %v591_v34, %v515_v38 }
 0x238   :  { %v516_v41 = vld [vmem:[%s2001_s3 + $0x338] sm:$0xff] }
 0x239   :  { %712 = vst.msk [vmem:[%s2002_s4 + $0x68] sm:$0xff] %vm704_vm13, %v606_v36  ;;  %v696_v33 = vmul.f32 %v591_v34, %v516_v41 }
 0x240   :  { %v517_v43 = vld [vmem:[%s2001_s3 + $0x340] sm:$0xff] }
 0x241   :  { %797 = vst [vmem:[%s2002_s4 + $0x310] sm:$0xff] %v691_v14  ;;  %v697_v49 = vmul.f32 %v591_v34, %v517_v43  ;;  %v566_v43 = vpop.permute.xlu1 %565 }
 0x248   :  { %v441_v21 = vld [vmem:[%s2001_s3 + $0xe0] sm:$0xff] }
 0x249   :  { %798 = vst [vmem:[%s2002_s4 + $0x318] sm:$0xff] %v692_v39  ;;  %v621_v50 = vmul.f32 %v541_v48, %v441_v21 }
 0x250   :  { %v442_v24 = vld [vmem:[%s2001_s3 + $0xe8] sm:$0xff] }
 0x251   :  { %799 = vst [vmem:[%s2002_s4 + $0x320] sm:$0xff] %v693_v42  ;;  %v622_v54 = vmul.f32 %v541_v48, %v442_v24 }
 0x258   :  { %v443_v31 = vld [vmem:[%s2001_s3 + $0xf0] sm:$0xff] }
 0x259   :  { %800 = vst [vmem:[%s2002_s4 + $0x328] sm:$0xff] %v694_v46  ;;  %v623_v58 = vmul.f32 %v541_v48, %v443_v31 }
 0x260   :  { %v444_v56 = vld [vmem:[%s2001_s3 + $0xf8] sm:$0xff] }
 0x261   :  { %801 = vst [vmem:[%s2002_s4 + $0x330] sm:$0xff] %v695_v47  ;;  %v624_v55 = vmul.f32 %v541_v48, %v444_v56 }
 0x268   :  { %v445_v53 = vld [vmem:[%s2001_s3 + $0x100] sm:$0xff] }
 0x269   :  { %802 = vst [vmem:[%s2002_s4 + $0x338] sm:$0xff] %v696_v33  ;;  %v625_v59 = vmul.f32 %v541_v48, %v445_v53 }
 0x270   :  { %v446_v45 = vld [vmem:[%s2001_s3 + $0x108] sm:$0xff] }
 0x271   :  { %803 = vst.msk [vmem:[%s2002_s4 + $0x340] sm:$0xff] %vm704_vm13, %v697_v49  ;;  %v626_v44 = vmul.f32 %v541_v48, %v446_v45 }
 0x278   :  { %v447_v25 = vld [vmem:[%s2001_s3 + $0x110] sm:$0xff] }
 0x279   :  { %727 = vst [vmem:[%s2002_s4 + $0xe0] sm:$0xff] %v621_v50  ;;  %v627_v63 = vmul.f32 %v541_v48, %v447_v25  ;;  %v586_v25 = vpop.permute.xlu0 %585 }
 0x280   :  { %v462_v60 = vld [vmem:[%s2001_s3 + $0x188] sm:$0xff] }
 0x281   :  { %728 = vst [vmem:[%s2002_s4 + $0xe8] sm:$0xff] %v622_v54  ;;  %v642_v3 = vmul.f32 %v556_v61, %v462_v60 }
 0x288   :  { %v463_v62 = vld [vmem:[%s2001_s3 + $0x190] sm:$0xff] }
 0x289   :  { %729 = vst [vmem:[%s2002_s4 + $0xf0] sm:$0xff] %v623_v58  ;;  %v643_v6 = vmul.f32 %v556_v61, %v463_v62 }
 0x290   :  { %v464_v0 = vld [vmem:[%s2001_s3 + $0x198] sm:$0xff] }
 0x291   :  { %730 = vst [vmem:[%s2002_s4 + $0xf8] sm:$0xff] %v624_v55  ;;  %v644_v51 = vmul.f32 %v556_v61, %v464_v0 }
 0x298   :  { %v465_v2 = vld [vmem:[%s2001_s3 + $0x1a0] sm:$0xff] }
 0x299   :  { %731 = vst [vmem:[%s2002_s4 + $0x100] sm:$0xff] %v625_v59  ;;  %v645_v12 = vmul.f32 %v556_v61, %v465_v2 }
 0x2a0   :  { %v466_v4 = vld [vmem:[%s2001_s3 + $0x1a8] sm:$0xff] }
 0x2a1   :  { %732 = vst [vmem:[%s2002_s4 + $0x108] sm:$0xff] %v626_v44  ;;  %v646_v40 = vmul.f32 %v556_v61, %v466_v4 }
 0x2a8   :  { %v467_v7 = vld [vmem:[%s2001_s3 + $0x1b0] sm:$0xff] }
 0x2a9   :  { %733 = vst.msk [vmem:[%s2002_s4 + $0x110] sm:$0xff] %vm704_vm13, %v627_v63  ;;  %v647_v57 = vmul.f32 %v556_v61, %v467_v7 }
 0x2b0   :  { %v468_v10 = vld [vmem:[%s2001_s3 + $0x1b8] sm:$0xff] }
 0x2b1   :  { %748 = vst [vmem:[%s2002_s4 + $0x188] sm:$0xff] %v642_v3  ;;  %v648_v18 = vmul.f32 %v556_v61, %v468_v10  ;;  %v581_v10 = vpop.permute.xlu1 %580 }
 0x2b8   :  { %v455_v9 = vld [vmem:[%s2001_s3 + $0x150] sm:$0xff] }
 0x2b9   :  { %749 = vst [vmem:[%s2002_s4 + $0x190] sm:$0xff] %v643_v6  ;;  %v635_v11 = vmul.f32 %v551_v13, %v455_v9 }
 0x2c0   :  { %v456_v15 = vld [vmem:[%s2001_s3 + $0x158] sm:$0xff] }
 0x2c1   :  { %750 = vst [vmem:[%s2002_s4 + $0x198] sm:$0xff] %v644_v51  ;;  %v636_v22 = vmul.f32 %v551_v13, %v456_v15 }
 0x2c8   :  { %v457_v17 = vld [vmem:[%s2001_s3 + $0x160] sm:$0xff] }
 0x2c9   :  { %751 = vst [vmem:[%s2002_s4 + $0x1a0] sm:$0xff] %v645_v12  ;;  %v637_v1 = vmul.f32 %v551_v13, %v457_v17 }
 0x2d0   :  { %v458_v19 = vld [vmem:[%s2001_s3 + $0x168] sm:$0xff] }
 0x2d1   :  { %752 = vst [vmem:[%s2002_s4 + $0x1a8] sm:$0xff] %v646_v40  ;;  %v638_v26 = vmul.f32 %v551_v13, %v458_v19 }
 0x2d8   :  { %v459_v20 = vld [vmem:[%s2001_s3 + $0x170] sm:$0xff] }
 0x2d9   :  { %753 = vst [vmem:[%s2002_s4 + $0x1b0] sm:$0xff] %v647_v57  ;;  %v639_v27 = vmul.f32 %v551_v13, %v459_v20 }
 0x2e0   :  { %v460_v52 = vld [vmem:[%s2001_s3 + $0x178] sm:$0xff] }
 0x2e1   :  { %754 = vst.msk [vmem:[%s2002_s4 + $0x1b8] sm:$0xff] %vm704_vm13, %v648_v18  ;;  %v640_v28 = vmul.f32 %v551_v13, %v460_v52 }
 0x2e8   :  { %v461_v23 = vld [vmem:[%s2001_s3 + $0x180] sm:$0xff] }
 0x2e9   :  { %741 = vst [vmem:[%s2002_s4 + $0x150] sm:$0xff] %v635_v11  ;;  %v641_v32 = vmul.f32 %v551_v13, %v461_v23 }
 0x2f0   :  { %v483_v29 = vld [vmem:[%s2001_s3 + $0x230] sm:$0xff] }
 0x2f1   :  { %742 = vst [vmem:[%s2002_s4 + $0x158] sm:$0xff] %v636_v22  ;;  %v663_v35 = vmul.f32 %v571_v8, %v483_v29 }
 0x2f8   :  { %v484_v30 = vld [vmem:[%s2001_s3 + $0x238] sm:$0xff] }
 0x2f9   :  { %743 = vst [vmem:[%s2002_s4 + $0x160] sm:$0xff] %v637_v1  ;;  %v664_v37 = vmul.f32 %v571_v8, %v484_v30 }
 0x300   :  { %v485_v34 = vld [vmem:[%s2001_s3 + $0x240] sm:$0xff] }
 0x301   :  { %744 = vst [vmem:[%s2002_s4 + $0x168] sm:$0xff] %v638_v26  ;;  %v665_v14 = vmul.f32 %v571_v8, %v485_v34 }
 0x308   :  { %v486_v5 = vld [vmem:[%s2001_s3 + $0x248] sm:$0xff] }
 0x309   :  { %745 = vst [vmem:[%s2002_s4 + $0x170] sm:$0xff] %v639_v27  ;;  %v666_v39 = vmul.f32 %v571_v8, %v486_v5 }
 0x310   :  { %v487_v36 = vld [vmem:[%s2001_s3 + $0x250] sm:$0xff] }
 0x311   :  { %746 = vst [vmem:[%s2002_s4 + $0x178] sm:$0xff] %v640_v28  ;;  %v667_v41 = vmul.f32 %v571_v8, %v487_v36 }
 0x318   :  { %v488_v16 = vld [vmem:[%s2001_s3 + $0x258] sm:$0xff] }
 0x319   :  { %747 = vst.msk [vmem:[%s2002_s4 + $0x180] sm:$0xff] %vm704_vm13, %v641_v32  ;;  %v668_v46 = vmul.f32 %v571_v8, %v488_v16 }
 0x320   :  { %v489_v38 = vld [vmem:[%s2001_s3 + $0x260] sm:$0xff] }
 0x321   :  { %769 = vst [vmem:[%s2002_s4 + $0x230] sm:$0xff] %v663_v35  ;;  %v669_v21 = vmul.f32 %v571_v8, %v489_v38 }
 0x328   :  { %v476_v42 = vld [vmem:[%s2001_s3 + $0x1f8] sm:$0xff] }
 0x329   :  { %770 = vst [vmem:[%s2002_s4 + $0x238] sm:$0xff] %v664_v37  ;;  %v656_v24 = vmul.f32 %v566_v43, %v476_v42 }
 0x330   :  { %v477_v47 = vld [vmem:[%s2001_s3 + $0x200] sm:$0xff] }
 0x331   :  { %771 = vst [vmem:[%s2002_s4 + $0x240] sm:$0xff] %v665_v14  ;;  %v657_v31 = vmul.f32 %v566_v43, %v477_v47 }
 0x338   :  { %v478_v48 = vld [vmem:[%s2001_s3 + $0x208] sm:$0xff] }
 0x339   :  { %772 = vst [vmem:[%s2002_s4 + $0x248] sm:$0xff] %v666_v39  ;;  %v658_v50 = vmul.f32 %v566_v43, %v478_v48 }
 0x340   :  { %v479_v33 = vld [vmem:[%s2001_s3 + $0x210] sm:$0xff] }
 0x341   :  { %773 = vst [vmem:[%s2002_s4 + $0x250] sm:$0xff] %v667_v41  ;;  %v659_v54 = vmul.f32 %v566_v43, %v479_v33 }
 0x348   :  { %v480_v49 = vld [vmem:[%s2001_s3 + $0x218] sm:$0xff] }
 0x349   :  { %774 = vst [vmem:[%s2002_s4 + $0x258] sm:$0xff] %v668_v46  ;;  %v660_v45 = vmul.f32 %v566_v43, %v480_v49 }
 0x350   :  { %v481_v56 = vld [vmem:[%s2001_s3 + $0x220] sm:$0xff] }
 0x351   :  { %775 = vst.msk [vmem:[%s2002_s4 + $0x260] sm:$0xff] %vm704_vm13, %v669_v21  ;;  %v661_v55 = vmul.f32 %v566_v43, %v481_v56 }
 0x358   :  { %v482_v53 = vld [vmem:[%s2001_s3 + $0x228] sm:$0xff] }
 0x359   :  { %762 = vst [vmem:[%s2002_s4 + $0x1f8] sm:$0xff] %v656_v24  ;;  %v662_v60 = vmul.f32 %v566_v43, %v482_v53 }
 0x360   :  { %v504_v58 = vld [vmem:[%s2001_s3 + $0x2d8] sm:$0xff] }
 0x361   :  { %763 = vst [vmem:[%s2002_s4 + $0x200] sm:$0xff] %v657_v31  ;;  %v684_v62 = vmul.f32 %v586_v25, %v504_v58 }
 0x368   :  { %v505_v59 = vld [vmem:[%s2001_s3 + $0x2e0] sm:$0xff] }
 0x369   :  { %764 = vst [vmem:[%s2002_s4 + $0x208] sm:$0xff] %v658_v50  ;;  %v685_v0 = vmul.f32 %v586_v25, %v505_v59 }
 0x370   :  { %v506_v61 = vld [vmem:[%s2001_s3 + $0x2e8] sm:$0xff] }
 0x371   :  { %765 = vst [vmem:[%s2002_s4 + $0x210] sm:$0xff] %v659_v54  ;;  %v686_v3 = vmul.f32 %v586_v25, %v506_v61 }
 0x378   :  { %v507_v44 = vld [vmem:[%s2001_s3 + $0x2f0] sm:$0xff] }
 0x379   :  { %766 = vst [vmem:[%s2002_s4 + $0x218] sm:$0xff] %v660_v45  ;;  %v687_v6 = vmul.f32 %v586_v25, %v507_v44 }
 0x380   :  { %v508_v63 = vld [vmem:[%s2001_s3 + $0x2f8] sm:$0xff] }
 0x381   :  { %767 = vst [vmem:[%s2002_s4 + $0x220] sm:$0xff] %v661_v55  ;;  %v688_v7 = vmul.f32 %v586_v25, %v508_v63 }
 0x388   :  { %v509_v2 = vld [vmem:[%s2001_s3 + $0x300] sm:$0xff] }
 0x389   :  { %768 = vst.msk [vmem:[%s2002_s4 + $0x228] sm:$0xff] %vm704_vm13, %v662_v60  ;;  %v689_v12 = vmul.f32 %v586_v25, %v509_v2 }
 0x390   :  { %v510_v4 = vld [vmem:[%s2001_s3 + $0x308] sm:$0xff] }
 0x391   :  { %790 = vst [vmem:[%s2002_s4 + $0x2d8] sm:$0xff] %v684_v62  ;;  %v690_v9 = vmul.f32 %v586_v25, %v510_v4 }
 0x398   :  { %v497_v51 = vld [vmem:[%s2001_s3 + $0x2a0] sm:$0xff] }
 0x399   :  { %791 = vst [vmem:[%s2002_s4 + $0x2e0] sm:$0xff] %v685_v0  ;;  %v677_v15 = vmul.f32 %v581_v10, %v497_v51 }
 0x3a0   :  { %v498_v40 = vld [vmem:[%s2001_s3 + $0x2a8] sm:$0xff] }
 0x3a1   :  { %792 = vst [vmem:[%s2002_s4 + $0x2e8] sm:$0xff] %v686_v3  ;;  %v678_v17 = vmul.f32 %v581_v10, %v498_v40 }
 0x3a8   :  { %v499_v13 = vld [vmem:[%s2001_s3 + $0x2b0] sm:$0xff] }
 0x3a9   :  { %793 = vst [vmem:[%s2002_s4 + $0x2f0] sm:$0xff] %v687_v6  ;;  %v679_v11 = vmul.f32 %v581_v10, %v499_v13 }
 0x3b0   :  { %v500_v57 = vld [vmem:[%s2001_s3 + $0x2b8] sm:$0xff] }
 0x3b1   :  { %794 = vst [vmem:[%s2002_s4 + $0x2f8] sm:$0xff] %v688_v7  ;;  %v680_v22 = vmul.f32 %v581_v10, %v500_v57 }
 0x3b8   :  { %v501_v18 = vld [vmem:[%s2001_s3 + $0x2c0] sm:$0xff] }
 0x3b9   :  { %795 = vst [vmem:[%s2002_s4 + $0x300] sm:$0xff] %v689_v12  ;;  %v681_v52 = vmul.f32 %v581_v10, %v501_v18 }
 0x3c0   :  { %v502_v19 = vld [vmem:[%s2001_s3 + $0x2c8] sm:$0xff] }
 0x3c1   :  { %796 = vst.msk [vmem:[%s2002_s4 + $0x308] sm:$0xff] %vm704_vm13, %v690_v9  ;;  %v682_v1 = vmul.f32 %v581_v10, %v502_v19 }
 0x3c8   :  { %v503_v20 = vld [vmem:[%s2001_s3 + $0x2d0] sm:$0xff] }
 0x3c9   :  { %783 = vst [vmem:[%s2002_s4 + $0x2a0] sm:$0xff] %v677_v15  ;;  %v683_v23 = vmul.f32 %v581_v10, %v503_v20 }
 0x3ca   :  { %784 = vst [vmem:[%s2002_s4 + $0x2a8] sm:$0xff] %v678_v17 }
 0x3cb   :  { %785 = vst [vmem:[%s2002_s4 + $0x2b0] sm:$0xff] %v679_v11 }
 0x3cc   :  { %786 = vst [vmem:[%s2002_s4 + $0x2b8] sm:$0xff] %v680_v22 }
 0x3cd   :  { %787 = vst [vmem:[%s2002_s4 + $0x2c0] sm:$0xff] %v681_v52 }
 0x3ce   :  { %788 = vst [vmem:[%s2002_s4 + $0x2c8] sm:$0xff] %v682_v1 }
 0x3cf   :  { %789 = vst.msk [vmem:[%s2002_s4 + $0x2d0] sm:$0xff] %vm704_vm13, %v683_v23 }

</bundles_post_ra>
